<compile_context>
chip_gen: v6e
topology: v6e:2x2x1
jax: 0.10.0
libtpu: 0.0.40
codegen_flags: <defaults>
</compile_context>

<pallas_src>
import jax
import jax.numpy as jnp
from jax.experimental import pallas as pl
from jax.experimental.pallas import tpu as pltpu


# ----------------------------------------------------------------------------- fused kernel

def _make_sepconv_kernel(*, stride, dilation, th_o, mode):
    """mode: 'plain' | 'scconv' (fused shortcut 1x1 conv) | 'resadd' (identity skip)."""
    s, d = stride, dilation

    def kernel(*refs):
        if mode == "scconv":
            (x_ref, top_ref, bot_ref, dw_ref, pw_ref, b_ref,
             xs_ref, wsc_ref, o_ref, xp_ref) = refs
        elif mode == "resadd":
            (x_ref, top_ref, bot_ref, dw_ref, pw_ref, b_ref,
             res_ref, o_ref, xp_ref) = refs
        else:
            x_ref, top_ref, bot_ref, dw_ref, pw_ref, b_ref, o_ref, xp_ref = refs

        t = pl.program_id(1)
        nt = pl.num_programs(1)
        th_in = th_o * s
        W, Cin = x_ref.shape[2], x_ref.shape[3]
        Wo, Cout = o_ref.shape[2], o_ref.shape[3]

        # ---- ReLU + 'same' zero padding assembled on-chip in a VMEM scratch ----
        xp_ref[...] = jnp.zeros(xp_ref.shape, xp_ref.dtype)
        xp_ref[d:d + th_in, d:d + W, :] = jnp.maximum(
            x_ref[0].astype(jnp.float32), 0.0)

        @pl.when(t > 0)                       # top halo rows (zero pad at first tile)
        def _():
            xp_ref[0:d, d:d + W, :] = jnp.maximum(
                top_ref[0].astype(jnp.float32), 0.0)

        @pl.when(t < nt - 1)                  # bottom halo rows (zero pad at last tile)
        def _():
            xp_ref[d + th_in:2 * d + th_in, d:d + W, :] = jnp.maximum(
                bot_ref[0].astype(jnp.float32), 0.0)

        # ---- depthwise 3x3, stride s, dilation d: only needed outputs computed ----
        dw = dw_ref[...].astype(jnp.float32)                  # (3, 3, Cin)
        acc = jnp.zeros((th_o, Wo, Cin), jnp.float32)
        for kh in range(3):
            for kw in range(3):
                if s == 1:
                    win = xp_ref[pl.ds(kh * d, th_o), pl.ds(kw * d, Wo), :]
                else:
                    win = xp_ref[pl.ds(kh * d, th_o, stride=s),
                                 pl.ds(kw * d, Wo, stride=s), :]
                acc = acc + win * dw[kh, kw, :]

        # ---- 1x1 conv on the MXU (BN1/BN2 pre-folded into pw_ref / b_ref) ----
        y = jnp.dot(acc.reshape(th_o * Wo, Cin), pw_ref[...],
                    preferred_element_type=jnp.float32)
        y = y + b_ref[...]
        if mode == "scconv":                  # fused shortcut 1x1 conv (+ its BN, folded)
            C0 = xs_ref.shape[3]
            xs = xs_ref[0].astype(jnp.float32).reshape(th_o * Wo, C0)
            y = y + jnp.dot(xs, wsc_ref[...], preferred_element_type=jnp.float32)
        elif mode == "resadd":                # identity skip
            y = y + res_ref[0].astype(jnp.float32).reshape(th_o * Wo, Cout)
        o_ref[0] = y.reshape(th_o, Wo, Cout).astype(o_ref.dtype)

    return kernel


# ----------------------------------------------------------------------------- pallas wrapper

def _pick_row_tile(ho, cap=8):
    t = min(cap, ho)
    while ho % t:
        t -= 1
    return t


def fused_sepconv(x, dw_w, pw_folded, bias, *, stride, dilation,
                  shortcut=None, residual=None, row_tile=None):
    """One fused SepConv: ReLU -> dw3x3(stride,dilation) -> [BN1] -> 1x1 -> [BN2] (+ skip).

    x          : (N, H, W, Cin)
    dw_w       : (3, 3, Cin)     depthwise weights
    pw_folded  : (Cin, Cout)     1x1 weights with BN1/BN2 scales folded in
    bias       : (Cout,)         fully folded output bias
    shortcut   : None or (xs, wsc_folded) with xs: (N, Ho, Wo, C0) already strided
    residual   : None or (N, Ho, Wo, Cout) added to the output (identity skip)
    """
    N, H, W, Cin = x.shape
    s, d = stride, dilation
    assert H % s == 0 and W % s == 0, "H/W must be divisible by the stride"
    Ho, Wo = H // s, W // s
    Cout = pw_folded.shape[1]
    th_o = _pick_row_tile(Ho) if row_tile is None else row_tile
    assert Ho % th_o == 0
    th_in = th_o * s
    assert th_in % d == 0 and H % d == 0, "row tile / H must be divisible by dilation"

    mode = "plain"
    extra_inputs, extra_specs = [], []
    if shortcut is not None:
        xs, wsc = shortcut
        mode = "scconv"
        extra_inputs = [xs, wsc]
        extra_specs = [
            pl.BlockSpec((1, th_o, Wo, xs.shape[3]), lambda n, t: (n, t, 0, 0)),
            pl.BlockSpec((xs.shape[3], Cout), lambda n, t: (0, 0)),
        ]
    elif residual is not None:
        mode = "resadd"
        extra_inputs = [residual]
        extra_specs = [pl.BlockSpec((1, th_o, Wo, Cout), lambda n, t: (n, t, 0, 0))]

    hb = th_in // d                       # halo block-index step (halo block is d rows)
    in_specs = [
        pl.BlockSpec((1, th_in, W, Cin), lambda n, t: (n, t, 0, 0)),
        pl.BlockSpec((1, d, W, Cin),
                     lambda n, t: (n, jnp.maximum(t * hb - 1, 0), 0, 0)),
        pl.BlockSpec((1, d, W, Cin),
                     lambda n, t: (n, jnp.minimum((t + 1) * hb, H // d - 1), 0, 0)),
        pl.BlockSpec((3, 3, Cin), lambda n, t: (0, 0, 0)),
        pl.BlockSpec((Cin, Cout), lambda n, t: (0, 0)),
        pl.BlockSpec((1, Cout), lambda n, t: (0, 0)),
    ] + extra_specs

    kernel = _make_sepconv_kernel(stride=s, dilation=d, th_o=th_o, mode=mode)
    return pl.pallas_call(
        kernel,
        out_shape=jax.ShapeDtypeStruct((N, Ho, Wo, Cout), x.dtype),
        grid=(N, Ho // th_o),
        in_specs=in_specs,
        out_specs=pl.BlockSpec((1, th_o, Wo, Cout), lambda n, t: (n, t, 0, 0)),
        scratch_shapes=[pltpu.VMEM((th_in + 2 * d, W + 2 * d, Cin), jnp.float32)],
        compiler_params=pltpu.CompilerParams(
            dimension_semantics=("parallel", "parallel"),
            vmem_limit_bytes=32 * 1024 * 1024,   # stays under v7x's 64 MiB physical VMEM
        ),
    )(x, x, x, dw_w, pw_folded, bias.reshape(1, Cout), *extra_inputs)


# ----------------------------------------------------------------------------- module forward (glue)

def sep_conv_block(x, dw_w, bn1_s, bn1_b, pw_w, bn2_s, bn2_b, *, stride, dilation,
                   shortcut=None, residual=None):
    """ReLU -> dw conv -> BN -> 1x1 conv -> BN (sep_with_act=False path), fully fused.

    shortcut: None or (xs, w_sc, sc_scale, sc_bias): strided block input + shortcut params.
    """
    # Fold BN1/BN2 into the pointwise weights + one output bias:
    #   ((dwconv)*s1 + b1) @ W * s2 + b2
    #     == dwconv @ (s1[:,None]*W*s2[None,:]) + ((b1 @ W)*s2 + b2)
    pw_f = (bn1_s[:, None] * pw_w) * bn2_s[None, :]
    bias = (bn1_b @ pw_w) * bn2_s + bn2_b
    sc = None
    if shortcut is not None:
        xs, w_sc, sc_s, sc_b = shortcut
        sc = (xs, w_sc * sc_s[None, :])     # fold shortcut-BN scale into its weights
        bias = bias + sc_b                  # ... and its shift into the shared bias
    return fused_sepconv(x, dw_w, pw_f, bias, stride=stride, dilation=dilation,
                         shortcut=sc, residual=residual)


def block_forward(x, params, *, stride, dilation, with_skip=True):
    feat1 = sep_conv_block(x, *params["sep1"], stride=1, dilation=dilation)
    feat2 = sep_conv_block(feat1, *params["sep2"], stride=1, dilation=dilation)
    sc = res = None
    if with_skip:
        if params["shortcut"] is not None:
            w_sc, sc_s, sc_b = params["shortcut"]
            xs = x[:, ::stride, ::stride, :]     # 1x1 conv with stride == subsample
            sc = (xs, w_sc, sc_s, sc_b)
        else:
            res = x
    feat3 = sep_conv_block(feat2, *params["sep3"], stride=stride, dilation=dilation,
                           shortcut=sc, residual=res)
    return feat1, feat2, feat3


# ----------------------------------------------------------------------------- pure-JAX reference

def _ref_sep(x, dw_w, s1, b1, pw_w, s2, b2, stride, dilation):
    xr = jax.nn.relu(x)
    C = xr.shape[-1]
    rhs = dw_w[:, :, None, :]                                # HWIO, depthwise
    h = jax.lax.conv_general_dilated(
        xr, rhs, (stride, stride), [(dilation, dilation)] * 2,
        rhs_dilation=(dilation, dilation),
        dimension_numbers=("NHWC", "HWIO", "NHWC"),
        feature_group_count=C)
    h = h * s1 + b1
    y = jnp.einsum("nhwc,cd->nhwd", h, pw_w)
    return y * s2 + b2


def block_forward_ref(x, params, *, stride, dilation, with_skip=True):
    f1 = _ref_sep(x, *params["sep1"], 1, dilation)
    f2 = _ref_sep(f1, *params["sep2"], 1, dilation)
    f3 = _ref_sep(f2, *params["sep3"], stride, dilation)
    if with_skip:
        if params["shortcut"] is not None:
            w_sc, ss, sb = params["shortcut"]
            sc = jnp.einsum("nhwc,cd->nhwd", x[:, ::stride, ::stride, :], w_sc) * ss + sb
        else:
            sc = x
        f3 = f3 + sc
    return f1, f2, f3


# ----------------------------------------------------------------------------- deterministic params

def _fold_bn(gamma, beta, mean, var, eps=1e-5):
    scale = gamma / jnp.sqrt(var + eps)
    return scale, beta - mean * scale


def _make_bn(key, c):
    k1, k2, k3, k4 = jax.random.split(key, 4)
    gamma = 1.0 + 0.1 * jax.random.normal(k1, (c,), jnp.float32)
    beta = 0.1 * jax.random.normal(k2, (c,), jnp.float32)
    mean = 0.1 * jax.random.normal(k3, (c,), jnp.float32)
    var = jax.random.uniform(k4, (c,), jnp.float32, minval=0.5, maxval=1.5)
    return _fold_bn(gamma, beta, mean, var)


def _make_sep_params(key, cin, cout):
    ks = jax.random.split(key, 4)
    # torch depthwise weight (cin, 1, 3, 3): dw_w[kh, kw, c] == W[c, 0, kh, kw]
    dw_w = 0.2 * jax.random.normal(ks[0], (3, 3, cin), jnp.float32)
    bn1_s, bn1_b = _make_bn(ks[1], cin)
    # torch 1x1 weight (cout, cin, 1, 1): pw_w == W[:, :, 0, 0].T
    pw_w = 0.2 * jax.random.normal(ks[2], (cin, cout), jnp.float32)
    bn2_s, bn2_b = _make_bn(ks[3], cout)
    return (dw_w, bn1_s, bn1_b, pw_w, bn2_s, bn2_b)


def make_block_params(key, in_chans, out_chans, stride):
    k1, k2, k3, k4 = jax.random.split(key, 4)
    params = {
        "sep1": _make_sep_params(k1, in_chans[0], out_chans[0]),
        "sep2": _make_sep_params(k2, in_chans[1], out_chans[1]),
        "sep3": _make_sep_params(k3, in_chans[2], out_chans[2]),
        "shortcut": None,
    }
    if not (stride == 1 and in_chans[0] == out_chans[-1]):
        ka, kb = jax.random.split(k4)
        w_sc = 0.2 * jax.random.normal(ka, (in_chans[0], out_chans[-1]), jnp.float32)
        sc_s, sc_b = _make_bn(kb, out_chans[-1])
        params["shortcut"] = (w_sc, sc_s, sc_b)
    return params


# ----------------------------------------------------------------------------- main

if __name__ == "__main__":
    key = jax.random.PRNGKey(0)
    in_chans = (8, 16, 16)
    out_chans = (16, 16, 32)
    stride, dilation = 2, 1
    N, H, W = 2, 16, 16

    kx, kp = jax.random.split(key)
    # NHWC input; torch-equivalent NCHW shape is (2, 8, 16, 16)
    x = jax.random.normal(kx, (N, H, W, in_chans[0]), jnp.float32)
    params = make_block_params(kp, in_chans, out_chans, stride)

    feats = block_forward(x, params, stride=stride, dilation=dilation)
    feats = jax.block_until_ready(feats)

    refs = block_forward_ref(x, params, stride=stride, dilation=dilation)
    refs = jax.block_until_ready(refs)

    expected_shapes = [(N, H, W, out_chans[0]),
                       (N, H, W, out_chans[1]),
                       (N, H // stride, W // stride, out_chans[2])]
    for f, r, s in zip(feats, refs, expected_shapes):
        assert f.shape == s and r.shape == s, (f.shape, r.shape, s)
        err = float(jnp.max(jnp.abs(f - r)))
        assert err < 1e-3, f"mismatch vs reference: max abs err = {err}"

    print("KERNEL_OK")
</pallas_src>

<mosaic_0001>
module attributes {stable_mosaic.version = 11 : i64} {
  func.func @kernel(%arg0: i32, %arg1: i32, %arg2: memref<1x8x16x8xf32, #tpu.memory_space<vmem>>, %arg3: memref<1x1x16x8xf32, #tpu.memory_space<vmem>>, %arg4: memref<1x1x16x8xf32, #tpu.memory_space<vmem>>, %arg5: memref<3x3x8xf32, #tpu.memory_space<vmem>>, %arg6: memref<8x16xf32, #tpu.memory_space<vmem>>, %arg7: memref<1x16xf32, #tpu.memory_space<vmem>>, %arg8: memref<1x8x16x16xf32, #tpu.memory_space<vmem>>, %arg9: memref<10x18x8xf32, #tpu.memory_space<vmem>>) attributes {dimension_semantics = [#tpu.dimension_semantics<parallel>, #tpu.dimension_semantics<parallel>], iteration_bounds = array<i64: 2, 2>, scalar_prefetch = 0 : i64, scratch_operands = 1 : i64, tpu.core_type = #tpu.core_type<tc>, window_params = [{transform_indices = @transform_0, window_bounds = array<i64: 1, 8, 16, 8>}, {transform_indices = @transform_1, window_bounds = array<i64: 1, 1, 16, 8>}, {transform_indices = @transform_2, window_bounds = array<i64: 1, 1, 16, 8>}, {pipeline_mode = #tpu.pipeline_mode<synchronous>, transform_indices = @transform_3, window_bounds = array<i64: 3, 3, 8>}, {pipeline_mode = #tpu.pipeline_mode<synchronous>, transform_indices = @transform_4, window_bounds = array<i64: 8, 16>}, {pipeline_mode = #tpu.pipeline_mode<synchronous>, transform_indices = @transform_5, window_bounds = array<i64: 1, 16>}, {transform_indices = @transform_6, window_bounds = array<i64: 1, 8, 16, 16>}]} {
    %cst = arith.constant 0.000000e+00 : f32
    %0 = vector.broadcast %cst : f32 to vector<10x18x8xf32>
    %c0 = arith.constant 0 : index
    %c0_0 = arith.constant 0 : index
    %c0_1 = arith.constant 0 : index
    %1 = vector.load %arg9[%c0, %c0_0, %c0_1] : memref<10x18x8xf32, #tpu.memory_space<vmem>>, vector<10x18x8xf32>
    tpu.vector_store %arg9[%c0, %c0_0, %c0_1], %0 {strides = array<i32>} : memref<10x18x8xf32, #tpu.memory_space<vmem>>, vector<10x18x8xf32>,
    %c0_2 = arith.constant 0 : index
    %c0_3 = arith.constant 0 : index
    %c0_4 = arith.constant 0 : index
    %c0_5 = arith.constant 0 : index
    %2 = vector.load %arg2[%c0_2, %c0_3, %c0_4, %c0_5] : memref<1x8x16x8xf32, #tpu.memory_space<vmem>>, vector<1x8x16x8xf32>
    %3 = vector.shape_cast %2 : vector<1x8x16x8xf32> to vector<8x16x8xf32>
    %cst_6 = arith.constant 0.000000e+00 : f32
    %4 = vector.broadcast %cst_6 : f32 to vector<8x16x8xf32>
    %5 = arith.maximumf %3, %4 : vector<8x16x8xf32>
    %c1 = arith.constant 1 : index
    %c1_7 = arith.constant 1 : index
    %c0_8 = arith.constant 0 : index
    %6 = vector.load %arg9[%c1, %c1_7, %c0_8] : memref<10x18x8xf32, #tpu.memory_space<vmem>>, vector<8x16x8xf32>
    tpu.vector_store %arg9[%c1, %c1_7, %c0_8], %5 {strides = array<i32>} : memref<10x18x8xf32, #tpu.memory_space<vmem>>, vector<8x16x8xf32>,
    %c0_i32 = arith.constant 0 : i32
    %7 = arith.cmpi sgt, %arg1, %c0_i32 : i32
    %8 = arith.extui %7 : i1 to i32
    %c0_i32_9 = arith.constant 0 : i32
    %9 = arith.cmpi ne, %8, %c0_i32_9 : i32
    scf.if %9 {
      %c0_50 = arith.constant 0 : index
      %c0_51 = arith.constant 0 : index
      %c0_52 = arith.constant 0 : index
      %c0_53 = arith.constant 0 : index
      %88 = vector.load %arg3[%c0_50, %c0_51, %c0_52, %c0_53] : memref<1x1x16x8xf32, #tpu.memory_space<vmem>>, vector<1x1x16x8xf32>
      %89 = vector.shape_cast %88 : vector<1x1x16x8xf32> to vector<1x16x8xf32>
      %cst_54 = arith.constant 0.000000e+00 : f32
      %90 = vector.broadcast %cst_54 : f32 to vector<1x16x8xf32>
      %91 = arith.maximumf %89, %90 : vector<1x16x8xf32>
      %c0_55 = arith.constant 0 : index
      %c1_56 = arith.constant 1 : index
      %c0_57 = arith.constant 0 : index
      %92 = vector.load %arg9[%c0_55, %c1_56, %c0_57] : memref<10x18x8xf32, #tpu.memory_space<vmem>>, vector<1x16x8xf32>
      tpu.vector_store %arg9[%c0_55, %c1_56, %c0_57], %91 {strides = array<i32>} : memref<10x18x8xf32, #tpu.memory_space<vmem>>, vector<1x16x8xf32>,
    } else {
    }
    %c1_i32 = arith.constant 1 : i32
    %10 = arith.cmpi slt, %arg1, %c1_i32 : i32
    %11 = arith.extui %10 : i1 to i32
    %c0_i32_10 = arith.constant 0 : i32
    %12 = arith.cmpi ne, %11, %c0_i32_10 : i32
    scf.if %12 {
      %c0_50 = arith.constant 0 : index
      %c0_51 = arith.constant 0 : index
      %c0_52 = arith.constant 0 : index
      %c0_53 = arith.constant 0 : index
      %88 = vector.load %arg4[%c0_50, %c0_51, %c0_52, %c0_53] : memref<1x1x16x8xf32, #tpu.memory_space<vmem>>, vector<1x1x16x8xf32>
      %89 = vector.shape_cast %88 : vector<1x1x16x8xf32> to vector<1x16x8xf32>
      %cst_54 = arith.constant 0.000000e+00 : f32
      %90 = vector.broadcast %cst_54 : f32 to vector<1x16x8xf32>
      %91 = arith.maximumf %89, %90 : vector<1x16x8xf32>
      %c9 = arith.constant 9 : index
      %c1_55 = arith.constant 1 : index
      %c0_56 = arith.constant 0 : index
      %92 = vector.load %arg9[%c9, %c1_55, %c0_56] : memref<10x18x8xf32, #tpu.memory_space<vmem>>, vector<1x16x8xf32>
      tpu.vector_store %arg9[%c9, %c1_55, %c0_56], %91 {strides = array<i32>} : memref<10x18x8xf32, #tpu.memory_space<vmem>>, vector<1x16x8xf32>,
    } else {
    }
    %c0_11 = arith.constant 0 : index
    %c0_12 = arith.constant 0 : index
    %c0_13 = arith.constant 0 : index
    %13 = vector.load %arg5[%c0_11, %c0_12, %c0_13] : memref<3x3x8xf32, #tpu.memory_space<vmem>>, vector<3x3x8xf32>
    %cst_14 = arith.constant 0.000000e+00 : f32
    %14 = vector.broadcast %cst_14 : f32 to vector<8x16x8xf32>
    %c0_15 = arith.constant 0 : index
    %c0_16 = arith.constant 0 : index
    %c0_17 = arith.constant 0 : index
    %15 = vector.load %arg9[%c0_15, %c0_16, %c0_17] : memref<10x18x8xf32, #tpu.memory_space<vmem>>, vector<8x16x8xf32>
    %16 = vector.extract_strided_slice %13 {offsets = [0, 0, 0], sizes = [1, 1, 8], strides = [1, 1, 1]} : vector<3x3x8xf32> to vector<1x1x8xf32>
    %17 = vector.shape_cast %16 : vector<1x1x8xf32> to vector<8xf32>
    %18 = vector.shape_cast %17 : vector<8xf32> to vector<1x1x8xf32>
    %19 = vector.broadcast %18 : vector<1x1x8xf32> to vector<8x16x8xf32>
    %20 = arith.mulf %15, %19 : vector<8x16x8xf32>
    %21 = arith.addf %14, %20 : vector<8x16x8xf32>
    %c0_18 = arith.constant 0 : index
    %c1_19 = arith.constant 1 : index
    %c0_20 = arith.constant 0 : index
    %22 = vector.load %arg9[%c0_18, %c1_19, %c0_20] : memref<10x18x8xf32, #tpu.memory_space<vmem>>, vector<8x16x8xf32>
    %23 = vector.extract_strided_slice %13 {offsets = [0, 1, 0], sizes = [1, 1, 8], strides = [1, 1, 1]} : vector<3x3x8xf32> to vector<1x1x8xf32>
    %24 = vector.shape_cast %23 : vector<1x1x8xf32> to vector<8xf32>
    %25 = vector.shape_cast %24 : vector<8xf32> to vector<1x1x8xf32>
    %26 = vector.broadcast %25 : vector<1x1x8xf32> to vector<8x16x8xf32>
    %27 = arith.mulf %22, %26 : vector<8x16x8xf32>
    %28 = arith.addf %21, %27 : vector<8x16x8xf32>
    %c0_21 = arith.constant 0 : index
    %c2 = arith.constant 2 : index
    %c0_22 = arith.constant 0 : index
    %29 = vector.load %arg9[%c0_21, %c2, %c0_22] : memref<10x18x8xf32, #tpu.memory_space<vmem>>, vector<8x16x8xf32>
    %30 = vector.extract_strided_slice %13 {offsets = [0, 2, 0], sizes = [1, 1, 8], strides = [1, 1, 1]} : vector<3x3x8xf32> to vector<1x1x8xf32>
    %31 = vector.shape_cast %30 : vector<1x1x8xf32> to vector<8xf32>
    %32 = vector.shape_cast %31 : vector<8xf32> to vector<1x1x8xf32>
    %33 = vector.broadcast %32 : vector<1x1x8xf32> to vector<8x16x8xf32>
    %34 = arith.mulf %29, %33 : vector<8x16x8xf32>
    %35 = arith.addf %28, %34 : vector<8x16x8xf32>
    %c1_23 = arith.constant 1 : index
    %c0_24 = arith.constant 0 : index
    %c0_25 = arith.constant 0 : index
    %36 = vector.load %arg9[%c1_23, %c0_24, %c0_25] : memref<10x18x8xf32, #tpu.memory_space<vmem>>, vector<8x16x8xf32>
    %37 = vector.extract_strided_slice %13 {offsets = [1, 0, 0], sizes = [1, 1, 8], strides = [1, 1, 1]} : vector<3x3x8xf32> to vector<1x1x8xf32>
    %38 = vector.shape_cast %37 : vector<1x1x8xf32> to vector<8xf32>
    %39 = vector.shape_cast %38 : vector<8xf32> to vector<1x1x8xf32>
    %40 = vector.broadcast %39 : vector<1x1x8xf32> to vector<8x16x8xf32>
    %41 = arith.mulf %36, %40 : vector<8x16x8xf32>
    %42 = arith.addf %35, %41 : vector<8x16x8xf32>
    %c1_26 = arith.constant 1 : index
    %c1_27 = arith.constant 1 : index
    %c0_28 = arith.constant 0 : index
    %43 = vector.load %arg9[%c1_26, %c1_27, %c0_28] : memref<10x18x8xf32, #tpu.memory_space<vmem>>, vector<8x16x8xf32>
    %44 = vector.extract_strided_slice %13 {offsets = [1, 1, 0], sizes = [1, 1, 8], strides = [1, 1, 1]} : vector<3x3x8xf32> to vector<1x1x8xf32>
    %45 = vector.shape_cast %44 : vector<1x1x8xf32> to vector<8xf32>
    %46 = vector.shape_cast %45 : vector<8xf32> to vector<1x1x8xf32>
    %47 = vector.broadcast %46 : vector<1x1x8xf32> to vector<8x16x8xf32>
    %48 = arith.mulf %43, %47 : vector<8x16x8xf32>
    %49 = arith.addf %42, %48 : vector<8x16x8xf32>
    %c1_29 = arith.constant 1 : index
    %c2_30 = arith.constant 2 : index
    %c0_31 = arith.constant 0 : index
    %50 = vector.load %arg9[%c1_29, %c2_30, %c0_31] : memref<10x18x8xf32, #tpu.memory_space<vmem>>, vector<8x16x8xf32>
    %51 = vector.extract_strided_slice %13 {offsets = [1, 2, 0], sizes = [1, 1, 8], strides = [1, 1, 1]} : vector<3x3x8xf32> to vector<1x1x8xf32>
    %52 = vector.shape_cast %51 : vector<1x1x8xf32> to vector<8xf32>
    %53 = vector.shape_cast %52 : vector<8xf32> to vector<1x1x8xf32>
    %54 = vector.broadcast %53 : vector<1x1x8xf32> to vector<8x16x8xf32>
    %55 = arith.mulf %50, %54 : vector<8x16x8xf32>
    %56 = arith.addf %49, %55 : vector<8x16x8xf32>
    %c2_32 = arith.constant 2 : index
    %c0_33 = arith.constant 0 : index
    %c0_34 = arith.constant 0 : index
    %57 = vector.load %arg9[%c2_32, %c0_33, %c0_34] : memref<10x18x8xf32, #tpu.memory_space<vmem>>, vector<8x16x8xf32>
    %58 = vector.extract_strided_slice %13 {offsets = [2, 0, 0], sizes = [1, 1, 8], strides = [1, 1, 1]} : vector<3x3x8xf32> to vector<1x1x8xf32>
    %59 = vector.shape_cast %58 : vector<1x1x8xf32> to vector<8xf32>
    %60 = vector.shape_cast %59 : vector<8xf32> to vector<1x1x8xf32>
    %61 = vector.broadcast %60 : vector<1x1x8xf32> to vector<8x16x8xf32>
    %62 = arith.mulf %57, %61 : vector<8x16x8xf32>
    %63 = arith.addf %56, %62 : vector<8x16x8xf32>
    %c2_35 = arith.constant 2 : index
    %c1_36 = arith.constant 1 : index
    %c0_37 = arith.constant 0 : index
    %64 = vector.load %arg9[%c2_35, %c1_36, %c0_37] : memref<10x18x8xf32, #tpu.memory_space<vmem>>, vector<8x16x8xf32>
    %65 = vector.extract_strided_slice %13 {offsets = [2, 1, 0], sizes = [1, 1, 8], strides = [1, 1, 1]} : vector<3x3x8xf32> to vector<1x1x8xf32>
    %66 = vector.shape_cast %65 : vector<1x1x8xf32> to vector<8xf32>
    %67 = vector.shape_cast %66 : vector<8xf32> to vector<1x1x8xf32>
    %68 = vector.broadcast %67 : vector<1x1x8xf32> to vector<8x16x8xf32>
    %69 = arith.mulf %64, %68 : vector<8x16x8xf32>
    %70 = arith.addf %63, %69 : vector<8x16x8xf32>
    %c2_38 = arith.constant 2 : index
    %c2_39 = arith.constant 2 : index
    %c0_40 = arith.constant 0 : index
    %71 = vector.load %arg9[%c2_38, %c2_39, %c0_40] : memref<10x18x8xf32, #tpu.memory_space<vmem>>, vector<8x16x8xf32>
    %72 = vector.extract_strided_slice %13 {offsets = [2, 2, 0], sizes = [1, 1, 8], strides = [1, 1, 1]} : vector<3x3x8xf32> to vector<1x1x8xf32>
    %73 = vector.shape_cast %72 : vector<1x1x8xf32> to vector<8xf32>
    %74 = vector.shape_cast %73 : vector<8xf32> to vector<1x1x8xf32>
    %75 = vector.broadcast %74 : vector<1x1x8xf32> to vector<8x16x8xf32>
    %76 = arith.mulf %71, %75 : vector<8x16x8xf32>
    %77 = arith.addf %70, %76 : vector<8x16x8xf32>
    %78 = vector.shape_cast %77 : vector<8x16x8xf32> to vector<128x8xf32>
    %c0_41 = arith.constant 0 : index
    %c0_42 = arith.constant 0 : index
    %79 = vector.load %arg6[%c0_41, %c0_42] : memref<8x16xf32, #tpu.memory_space<vmem>>, vector<8x16xf32>
    %cst_43 = arith.constant dense<0.000000e+00> : vector<128x16xf32>
    %80 = tpu.matmul %78, %79, %cst_43 {dimension_numbers = #tpu.dot_dimension_numbers<[1], [0], [0], [1], [0, 0, 1, 1], [], []>} : vector<128x8xf32>, vector<8x16xf32>, vector<128x16xf32> -> vector<128x16xf32>
    %c0_44 = arith.constant 0 : index
    %c0_45 = arith.constant 0 : index
    %81 = vector.load %arg7[%c0_44, %c0_45] : memref<1x16xf32, #tpu.memory_space<vmem>>, vector<1x16xf32>
    %82 = vector.broadcast %81 : vector<1x16xf32> to vector<128x16xf32>
    %83 = arith.addf %80, %82 : vector<128x16xf32>
    %84 = vector.shape_cast %83 : vector<128x16xf32> to vector<8x16x16xf32>
    %c0_46 = arith.constant 0 : index
    %c0_47 = arith.constant 0 : index
    %c0_48 = arith.constant 0 : index
    %c0_49 = arith.constant 0 : index
    %85 = vector.load %arg8[%c0_46, %c0_47, %c0_48, %c0_49] : memref<1x8x16x16xf32, #tpu.memory_space<vmem>>, vector<1x8x16x16xf32>
    %86 = vector.shape_cast %85 : vector<1x8x16x16xf32> to vector<8x16x16xf32>
    %87 = vector.shape_cast %84 : vector<8x16x16xf32> to vector<1x8x16x16xf32>
    tpu.vector_store %arg8[%c0_46, %c0_47, %c0_48, %c0_49], %87 {strides = array<i32>} : memref<1x8x16x16xf32, #tpu.memory_space<vmem>>, vector<1x8x16x16xf32>,
    return
  }
  func.func @transform_0(%arg0: i32, %arg1: i32) -> (i32, i32, i32, i32) {
    %c0_i32 = arith.constant 0 : i32
    %c0_i32_0 = arith.constant 0 : i32
    %c0_i32_1 = arith.constant 0 : i32
    return %arg0, %arg1, %c0_i32, %c0_i32_0 : i32, i32, i32, i32
  }
  func.func @transform_1(%arg0: i32, %arg1: i32) -> (i32, i32, i32, i32) {
    %c8_i32 = arith.constant 8 : i32
    %0 = arith.muli %arg1, %c8_i32 : i32
    %c1_i32 = arith.constant 1 : i32
    %1 = arith.subi %0, %c1_i32 : i32
    %c0_i32 = arith.constant 0 : i32
    %2 = arith.maxsi %1, %c0_i32 : i32
    %c0_i32_0 = arith.constant 0 : i32
    %c0_i32_1 = arith.constant 0 : i32
    %c0_i32_2 = arith.constant 0 : i32
    return %arg0, %2, %c0_i32_0, %c0_i32_1 : i32, i32, i32, i32
  }
  func.func @transform_2(%arg0: i32, %arg1: i32) -> (i32, i32, i32, i32) {
    %c1_i32 = arith.constant 1 : i32
    %0 = arith.addi %arg1, %c1_i32 : i32
    %c8_i32 = arith.constant 8 : i32
    %1 = arith.muli %0, %c8_i32 : i32
    %c15_i32 = arith.constant 15 : i32
    %2 = arith.minsi %1, %c15_i32 : i32
    %c0_i32 = arith.constant 0 : i32
    %c0_i32_0 = arith.constant 0 : i32
    %c0_i32_1 = arith.constant 0 : i32
    return %arg0, %2, %c0_i32, %c0_i32_0 : i32, i32, i32, i32
  }
  func.func @transform_3(%arg0: i32, %arg1: i32) -> (i32, i32, i32) {
    %c0_i32 = arith.constant 0 : i32
    %c0_i32_0 = arith.constant 0 : i32
    %c0_i32_1 = arith.constant 0 : i32
    %c0_i32_2 = arith.constant 0 : i32
    return %c0_i32, %c0_i32_0, %c0_i32_1 : i32, i32, i32
  }
  func.func @transform_4(%arg0: i32, %arg1: i32) -> (i32, i32) {
    %c0_i32 = arith.constant 0 : i32
    %c0_i32_0 = arith.constant 0 : i32
    %c0_i32_1 = arith.constant 0 : i32
    return %c0_i32, %c0_i32_0 : i32, i32
  }
  func.func @transform_5(%arg0: i32, %arg1: i32) -> (i32, i32) {
    %c0_i32 = arith.constant 0 : i32
    %c0_i32_0 = arith.constant 0 : i32
    %c0_i32_1 = arith.constant 0 : i32
    return %c0_i32, %c0_i32_0 : i32, i32
  }
  func.func @transform_6(%arg0: i32, %arg1: i32) -> (i32, i32, i32, i32) {
    %c0_i32 = arith.constant 0 : i32
    %c0_i32_0 = arith.constant 0 : i32
    %c0_i32_1 = arith.constant 0 : i32
    return %arg0, %arg1, %c0_i32, %c0_i32_0 : i32, i32, i32, i32
  }
}

</mosaic_0001>

<bundles_post_ra>
// kernel: tpu_custom_call.1
= control target key start
LH: loop header
LB: loop body
LE: loop exit
PB: predicated region body
PF: predicated region fallthrough
CT: control target
= control target key end

     0   :  { %11 = vsyncpa [#allocation4], 0  ;;  %s2344_s0 = inlined_call_operand.vmem [shape: f32[2,16,16,8], index: 0, kind: input, shape index: {}]   ;;  %s2345_s1 = inlined_call_operand.vmem [shape: f32[2,16,16,8], index: 1, kind: input, shape index: {}]   ;;  %s2346_s2 = inlined_call_operand.vmem [shape: f32[2,16,16,8], index: 2, kind: input, shape index: {}]   ;;  %s2347_s3 = inlined_call_operand.vmem [shape: f32[3,3,8], index: 3, kind: input, shape index: {}]   ;;  %s2348_s4 = inlined_call_operand.vmem [shape: f32[8,16], index: 4, kind: input, shape index: {}]   ;;  %s2349_s5 = inlined_call_operand.vmem [shape: f32[1,16], index: 5, kind: input, shape index: {}]   ;;  %s2350_s6 = inlined_call_operand.hbm [shape: f32[2,16,16,16], index: 6, kind: output, shape index: {}]  }
   0x1   :  { %13 = vsyncpa [#allocation4 + $0x1], 0  ;;  %s1664_s21 = smov 0   ;;  %s1666_s22 = smov 0  }
   0x2   :  { %s1668_s23 = smov 0   ;;  %s1670_s24 = smov 0  }
   0x3   :  { %s1672_s25 = smov 0   ;;  %s1674_s26 = smov 0  }
   0x4   :  { %s1676_s27 = smov 0   ;;  %s1678_s28 = smov 0  }
   0x5 LB: > { %2354 = sst [smem:[#allocation6_spill]] %s1619_s27  ;;  %s1344_s29 = sadd.s32 4294967295, %s1623_s28   ;;  %s1623_s28 = sphi %s1678_s28, %s19_s28   ;;  %s1619_s27 = sphi %s1676_s27, %s2362_s27   ;;  %s1615_s26 = sphi %s1674_s26, %s2367_s26   ;;  %s1611_s25 = sphi %s1672_s25, %s2360_s25   ;;  %s1607_s24 = sphi %s1670_s24, %s2366_s24   ;;  %s1603_s23 = sphi %s1668_s23, %s2365_s23   ;;  %s1599_s22 = sphi %s1666_s22, %s2364_s22   ;;  %s1595_s21 = sphi %s1664_s21, %s2363_s21  }
   0x6   : > { %s1345_s30 = sadd.s32 4294967294, %s1623_s28   ;;  %s28_s7 = sadd.s32 1, %s1615_s26 }
   0x7   : > { %p29_p0 = scmp.ge.s32.totalorder %s28_s7, 2  ;;  %s31_s8 = sadd.s32 1, %s1619_s27 }
   0x8   : > { %p213_p1 = scmp.ne.s32.totalorder %s1603_s23, %s1599_s22  ;;  %p214_p2 = scmp.eq.s32.totalorder %s1344_s29, 3 }
   0x9   : > { %s2369_s7 = smov (%p29_p0, %s28_s7), 0  ;;  %s2371_s8 = smov (!%p29_p0, %s31_s8), %s1619_s27 }
   0xa   : > { %2355 = sst [smem:[#allocation7_spill]] %s2369_s7  ;;  %s199_s9 = ssub.s32 %s1615_s26, %s2369_s7 }
   0xb   : > { %p1715_p3 = por %p214_p2, %p213_p1  ;;  %p33_p4 = scmp.ge.s32.totalorder %s2371_s8, 2 }
   0xc   : > { %p219_p5 = scmp.ne.s32.totalorder %s1599_s22, %s1595_s21  ;;  %p220_p6 = scmp.eq.s32.totalorder %s1345_s30, 3 }
   0xd   : > { %p1354_p7 = scmp.ge.s32.totalorder %s1623_s28, 1  ;;  %s2373_s8 = smov (%p33_p4, %s2371_s8), 0 }
   0xe   : > { %2357 = sst [smem:[#allocation8_spill]] %s2373_s8  ;;  %p1724_p8 = por %p220_p6, %p219_p5 }
   0xf   : > { %p301_p9 = scmp.lt.s32.totalorder %s1623_s28, 5  ;;  %s198_s12 = ssub.s32 %s1619_s27, %s2373_s8 }
  0x10   : > { %s203_s13 = sadd.s32 1, %s1603_s23  ;;  %s200_s14 = sor.u32 %s199_s9, %s198_s12 }
  0x11   : > { %p302_p10 = pnand %p1354_p7, %p301_p9  ;;  %p201_p11 = scmp.eq.s32.totalorder %s200_s14, 0 }
  0x12   : > { %s359_s16 = sand.u32 (!%p302_p10), 1, %s1599_s22   ;;  %s1737_s17 = sshll.u32 (!%p302_p10), %s1607_s24, 3 }
  0x13   : > { %s1733_s15 = scalar_select %p201_p11, %s1603_s23, %s203_s13  }
  0x14   : > { %305 = sbr.rel (%p302_p10) target bundleno = 360 (0x168), region = 44  ;;  %s1771_s18 = sshll.u32 (!%p302_p10), %s359_s16, 7 }
  0x15   : > { %p363_p12 = scmp.lt.s32.totalorder (!%p302_p10), %s1611_s25, 1  ;;  %p365_p13 = scmp.lt.s32.totalorder (!%p302_p10), %s1737_s17, 15 }
  0x16   : > { %s1361_s30 = sadd.s32 (!%p302_p10), 4294967295, %s1737_s17  ;;  %s1410_s14 = sadd.s32 (!%p302_p10), 8, %s1737_s17 }
  0x17   : > { %p375_p0 = scmp.gt.s32.totalorder (!%p302_p10), %s1361_s30, 0  ;;  %p1362_p1 = scmp.lt.s32.totalorder (!%p302_p10), %s1361_s30, 15 }
  0x18   : > { %p1787_p2 = scmp.lt.s32.totalorder (!%p302_p10), %s1410_s14, 15  ;;  %p1377_p4 = scmp.le.s32.totalorder (!%p302_p10), %s1607_s24, 0 }
  0x19   : > { %vm408_vm0 = vcmask 64512   ;;  %vm411_vm1 = vcmask 58368   ;;  %v1625_v0 = vmov 0.0   ;;  %s364_s19 = scalar_select %p363_p12, %s1611_s25, 1 }
  0x1a   : > { %413 = vst.msk [vmem:[#allocation2 + $0x18] sm:$0xff] %vm408_vm0, %v1625_v0  ;;  %409 = vst.msk [vmem:[#allocation2] sm:$0xff] %vm408_vm0, %v1625_v0  ;;  %s366_s20 = scalar_select %p365_p13, %s1737_s17, 15 }
  0x1b   : > { %410 = vst.msk [vmem:[#allocation2 + $0x8] sm:$0xff] %vm408_vm0, %v1625_v0  ;;  %414 = vst.msk [vmem:[#allocation2 + $0x20] sm:$0xff] %vm408_vm0, %v1625_v0  ;;  %s1777_s29 = sshll.u32 %s364_s19, 5  ;;  %s2375_s14 = smov (!%p1787_p2, %s1410_s14), 15 }
  0x1c   : > { %416 = vst.msk [vmem:[#allocation2 + $0x30] sm:$0xff] %vm408_vm0, %v1625_v0  ;;  %417 = vst.msk [vmem:[#allocation2 + $0x38] sm:$0xff] %vm408_vm0, %v1625_v0  ;;  %s1357_s9 = sshll.u32 %s366_s20, 1  ;;  %s2379_s14 = smov (!%p1787_p2, %s2375_s14), 15 }
  0x1d   : > { %419 = vst.msk [vmem:[#allocation2 + $0x48] sm:$0xff] %vm408_vm0, %v1625_v0  ;;  %420 = vst.msk [vmem:[#allocation2 + $0x50] sm:$0xff] %vm408_vm0, %v1625_v0  ;;  %s369_s12 = sadd.s32 %s1777_s29, %s1357_s9  ;;  %s1374_s17 = sshll.u32 %s2379_s14, 1 }
  0x1e   : > { %422 = vst.msk [vmem:[#allocation2 + $0x60] sm:$0xff] %vm408_vm0, %v1625_v0  ;;  %423 = vst.msk [vmem:[#allocation2 + $0x68] sm:$0xff] %vm408_vm0, %v1625_v0  ;;  %s1359_s13 = sshll.u32 %s369_s12, 3  ;;  %s400_s9 = sadd.s32 %s1374_s17, %s1777_s29 }
  0x1f   : > { %425 = vst.msk [vmem:[#allocation2 + $0x78] sm:$0xff] %vm408_vm0, %v1625_v0  ;;  %426 = vst.msk [vmem:[#allocation2 + $0x80] sm:$0xff] %vm408_vm0, %v1625_v0  ;;  %s1785_s27 = scalar_lea.vmem %s2344_s0, %s1359_s13  ;;  %s1376_s19 = sshll.u32 %s400_s9, 3 }
  0x20   : > { %428 = vst.msk [vmem:[#allocation2 + $0x90] sm:$0xff] %vm408_vm0, %v1625_v0  ;;  %429 = vst.msk [vmem:[#allocation2 + $0x98] sm:$0xff] %vm408_vm0, %v1625_v0  ;;  %s376_s20 = scalar_select %p375_p0, %s1361_s30, 0  ;;  %v440_v1 = vld [vmem:[%s1785_s27] sm:$0xff]  ;;  %v441_v2 = vld [vmem:[%s1785_s27 + $0x8] sm:$0xff] }
  0x21   : > { %431 = vst.msk [vmem:[#allocation2 + $0xa8] sm:$0xff] %vm408_vm0, %v1625_v0  ;;  %432 = vst.msk [vmem:[#allocation2 + $0xb0] sm:$0xff] %vm408_vm0, %v1625_v0  ;;  %v442_v3 = vld [vmem:[%s1785_s27 + $0x10] sm:$0xff]  ;;  %v456_v4 = vmax.f32 %v440_v1, 0.0  ;;  %v457_v5 = vmax.f32 %v441_v2, 0.0  ;;  %v443_v7 = vld [vmem:[%s1785_s27 + $0x18] sm:$0xff] }
  0x22   : > { %434 = vst.msk [vmem:[#allocation2 + $0xc0] sm:$0xff] %vm408_vm0, %v1625_v0  ;;  %435 = vst.msk [vmem:[#allocation2 + $0xc8] sm:$0xff] %vm408_vm0, %v1625_v0  ;;  %v458_v6 = vmax.f32 %v442_v3, 0.0  ;;  %v444_v8 = vld [vmem:[%s1785_s27 + $0x20] sm:$0xff]  ;;  %s2377_s20 = smov (!%p1362_p1, %s376_s20), 15  ;;  %v459_v9 = vmax.f32 %v443_v7, 0.0 }
  0x23   : > { %437 = vst.msk [vmem:[#allocation2 + $0xd8] sm:$0xff] %vm408_vm0, %v1625_v0  ;;  %438 = vst.msk [vmem:[#allocation2 + $0xe0] sm:$0xff] %vm408_vm0, %v1625_v0  ;;  %v460_v10 = vmax.f32 %v444_v8, 0.0  ;;  %v445_v11 = vld [vmem:[%s1785_s27 + $0x28] sm:$0xff]  ;;  %v446_v12 = vld [vmem:[%s1785_s27 + $0x30] sm:$0xff]  ;;  %s1367_s7 = sshll.u32 %s2377_s20, 1 }
  0x24   : > { %415 = vst.msk [vmem:[#allocation2 + $0x28] sm:$0x3] %vm411_vm1, %v1625_v0  ;;  %412 = vst.msk [vmem:[#allocation2 + $0x10] sm:$0x3] %vm411_vm1, %v1625_v0  ;;  %v447_v13 = vld [vmem:[%s1785_s27 + $0x38] sm:$0xff]  ;;  %v461_v14 = vmax.f32 %v445_v11, 0.0  ;;  %s383_s8 = sadd.s32 %s1367_s7, %s1777_s29  ;;  %s402_s7 = scalar_lea.vmem %s2346_s2, %s1376_s19 }
  0x25   : > { %418 = vst.msk [vmem:[#allocation2 + $0x40] sm:$0x3] %vm411_vm1, %v1625_v0  ;;  %421 = vst.msk [vmem:[#allocation2 + $0x58] sm:$0x3] %vm411_vm1, %v1625_v0  ;;  %v462_v15 = vmax.f32 %v446_v12, 0.0  ;;  %v463_v16 = vmax.f32 %v447_v13, 0.0 }
  0x26   : > { %424 = vst.msk [vmem:[#allocation2 + $0x70] sm:$0x3] %vm411_vm1, %v1625_v0  ;;  %427 = vst.msk [vmem:[#allocation2 + $0x88] sm:$0x3] %vm411_vm1, %v1625_v0  ;;  %v448_v17 = vld [vmem:[%s1785_s27 + $0x40] sm:$0xff]  ;;  %v449_v18 = vld [vmem:[%s1785_s27 + $0x48] sm:$0xff] }
  0x27   : > { %430 = vst.msk [vmem:[#allocation2 + $0xa0] sm:$0x3] %vm411_vm1, %v1625_v0  ;;  %433 = vst.msk [vmem:[#allocation2 + $0xb8] sm:$0x3] %vm411_vm1, %v1625_v0  ;;  %v464_v19 = vmax.f32 %v448_v17, 0.0  ;;  %v465_v20 = vmax.f32 %v449_v18, 0.0 }
  0x28   : > { %436 = vst.msk [vmem:[#allocation2 + $0xd0] sm:$0x3] %vm411_vm1, %v1625_v0  ;;  %439 = vst.msk [vmem:[#allocation2 + $0xe8] sm:$0x3] %vm411_vm1, %v1625_v0  ;;  %v450_v21 = vld [vmem:[%s1785_s27 + $0x50] sm:$0xff]  ;;  %v451_v22 = vld [vmem:[%s1785_s27 + $0x58] sm:$0xff] }
  0x29   : > { %473 = vst.msk [vmem:[#allocation2 + $0x19] sm:$0xff] %vm408_vm0, %v456_v4  ;;  %474 = vst.msk [vmem:[#allocation2 + $0x21] sm:$0xff] %vm408_vm0, %v457_v5  ;;  %v452_v23 = vld [vmem:[%s1785_s27 + $0x60] sm:$0xff]  ;;  %v466_v24 = vmax.f32 %v450_v21, 0.0  ;;  %v467_v25 = vmax.f32 %v451_v22, 0.0  ;;  %v453_v27 = vld [vmem:[%s1785_s27 + $0x68] sm:$0xff] }
  0x2a   : > { %475 = vst.msk [vmem:[#allocation2 + $0x31] sm:$0xff] %vm408_vm0, %v458_v6  ;;  %476 = vst.msk [vmem:[#allocation2 + $0x39] sm:$0xff] %vm408_vm0, %v459_v9  ;;  %v468_v26 = vmax.f32 %v452_v23, 0.0  ;;  %v454_v28 = vld [vmem:[%s1785_s27 + $0x70] sm:$0xff]  ;;  %s1369_s30 = sshll.u32 %s383_s8, 3  ;;  %v469_v29 = vmax.f32 %v453_v27, 0.0 }
  0x2b   : > { %477 = vst.msk [vmem:[#allocation2 + $0x49] sm:$0xff] %vm408_vm0, %v460_v10  ;;  %478 = vst.msk [vmem:[#allocation2 + $0x51] sm:$0xff] %vm408_vm0, %v461_v14  ;;  %v470_v30 = vmax.f32 %v454_v28, 0.0  ;;  %v455_v31 = vld [vmem:[%s1785_s27 + $0x78] sm:$0xff]  ;;  %s385_s14 = scalar_lea.vmem %s2345_s1, %s1369_s30  ;;  %s1840_s27 = scalar_lea.vmem [#allocation3], %s1771_s18 }
  0x2c   : > { %479 = vst.msk [vmem:[#allocation2 + $0x61] sm:$0xff] %vm408_vm0, %v462_v15  ;;  %480 = vst.msk [vmem:[#allocation2 + $0x69] sm:$0xff] %vm408_vm0, %v463_v16  ;;  %v471_v32 = vmax.f32 %v455_v31, 0.0  ;;  %492 = sbr.rel (%p1377_p4) target bundleno = 53 (0x35), region = 48 }
  0x2d   : > { %481 = vst.msk [vmem:[#allocation2 + $0x79] sm:$0xff] %vm408_vm0, %v464_v19  ;;  %482 = vst.msk [vmem:[#allocation2 + $0x81] sm:$0xff] %vm408_vm0, %v465_v20 }
  0x2e   : > { %483 = vst.msk [vmem:[#allocation2 + $0x91] sm:$0xff] %vm408_vm0, %v466_v24  ;;  %484 = vst.msk [vmem:[#allocation2 + $0x99] sm:$0xff] %vm408_vm0, %v467_v25 }
  0x2f   : > { %485 = vst.msk [vmem:[#allocation2 + $0xa9] sm:$0xff] %vm408_vm0, %v468_v26  ;;  %486 = vst.msk [vmem:[#allocation2 + $0xb1] sm:$0xff] %vm408_vm0, %v469_v29 }
  0x30   : > { %487 = vst.msk [vmem:[#allocation2 + $0xc1] sm:$0xff] %vm408_vm0, %v470_v30  ;;  %488 = vst.msk [vmem:[#allocation2 + $0xc9] sm:$0xff] %vm408_vm0, %v471_v32 }
  0x31   : > { %v493_v33 = vld [vmem:[%s385_s14] sm:$0xff]  ;;  %v494_v34 = vld [vmem:[%s385_s14 + $0x8] sm:$0xff] }
  0x32   : > { %v495_v35 = vmax.f32 %v493_v33, 0.0  ;;  %v496_v36 = vmax.f32 %v494_v34, 0.0 }
  0x34   : > { %497 = vst.msk [vmem:[#allocation2 + $0x1] sm:$0xff] %vm408_vm0, %v495_v35  ;;  %498 = vst.msk [vmem:[#allocation2 + $0x9] sm:$0xff] %vm408_vm0, %v496_v36 }
  0x35 PF: > { %p1378_p5 = scmp.ge.s32.totalorder %s1607_s24, 1 }
  0x37   : > { %502 = sbr.rel (%p1378_p5) target bundleno = 64 (0x40), region = 52 }
  0x3c   : > { %v503_v37 = vld [vmem:[%s402_s7] sm:$0xff]  ;;  %v504_v38 = vld [vmem:[%s402_s7 + $0x8] sm:$0xff] }
  0x3d   : > { %v505_v39 = vmax.f32 %v503_v37, 0.0  ;;  %v506_v40 = vmax.f32 %v504_v38, 0.0 }
  0x3f   : > { %508 = vst.msk [vmem:[#allocation2 + $0xd9] sm:$0xff] %vm408_vm0, %v505_v39  ;;  %509 = vst.msk [vmem:[#allocation2 + $0xe1] sm:$0xff] %vm408_vm0, %v506_v40 }
  0x40 PF: > { %v982_v41 = vld [vmem:[%s2348_s4] sm:$0xff]  ;;  %v529_v42 = vlaneseq  ;;  %v512_v46 = vld [vmem:[%s2347_s3 + $0x8] sm:$0x7]  ;;  %v1866_v56 = vld [vmem:[#allocation2 + $0x18] sm:$0xff]  ;;  %vm1183_vm2 = vcmask 130048   ;;  %s1411_s20 = sshll.u32 %s1607_s24, 4 }
  0x41   : > { %1429 = vmatprep.subr.mxu0 %v982_v41  ;;  %1455 = vmatprep.subr.mxu1 %v982_v41  ;;  %v510_v44 = vld [vmem:[%s2347_s3] sm:$0x7]  ;;  %v511_v45 = vld [vmem:[%s2347_s3 + $0x4] sm:$0x7]  ;;  %v1893_v7 = vld [vmem:[#allocation2 + $0x78] sm:$0xff]  ;;  %s1399_s7 = sshll.u32 %s1611_s25, 5 }
  0x42   : > { %1430 = vmatpush3.msra.mxu0 %v982_v41  ;;  %1456 = vmatpush3.msra.mxu1 %v982_v41  ;;  %v530_v43 = vshrl.u32 %v529_v42, 7  ;;  %v513_v50 = vld [vmem:[#allocation2] sm:$0xff]  ;;  %v1895_v9 = vld [vmem:[#allocation2 + $0x30] sm:$0xff]  ;;  %v514_v13 = vld [vmem:[#allocation2 + $0x8] sm:$0xff]  ;;  %s1214_s18 = sadd.s32 %s1411_s20, %s1399_s7  ;;  %s1217_s17 = sshll.u32 %s1840_s27, 4  ;;  %s2285_s17 = int_to_ptr.vmem [resolvable:$true] %s1217_s17 }
  0x43   : > { %v565_v51 = vld [vmem:[#allocation2 + $0x1] sm:$0xff]  ;;  %v1889_v5 = vld [vmem:[#allocation2 + $0x19] sm:$0xff]  ;;  %v566_v14 = vld [vmem:[#allocation2 + $0x9] sm:$0xff]  ;;  %s1400_s8 = sshll.u32 %s1214_s18, 7  ;;  %s2293_s9 = scalar_lea.sflag [#allocation4], %s359_s16 }
  0x44   : > { %v531_v47 = vsub.s32 0, %v530_v43  ;;  %v583_v48 = vsub.s32 1, %v530_v43  ;;  %v635_v49 = vsub.s32 2, %v530_v43  ;;  %v617_v52 = vld [vmem:[#allocation2 + $0x2] sm:$0xff]  ;;  %v1891_v6 = vld [vmem:[#allocation2 + $0x1a] sm:$0xff]  ;;  %v1909_v18 = vld [vmem:[#allocation2 + $0x31] sm:$0xff]  ;;  %s2283_s25 = scalar_lea.hbm %s2350_s6, %s1400_s8 }
  0x45   : > { %v1876_v61 = vld [vmem:[#allocation2 + $0x60] sm:$0xff]  ;;  %v618_v20 = vld [vmem:[#allocation2 + $0xa] sm:$0xff]  ;;  %v1923_v28 = vld [vmem:[#allocation2 + $0x32] sm:$0xff]  ;;  %s1531_s12 = scalar_lea.vmem %s2285_s17, 2048  ;;  %s1626_s13 = smov [#allocation3]  }
  0x46   : > { %v1860_v53 = vrot.slane %v510_v44, %v531_v47  ;;  %v1862_v54 = vrot.slane %v510_v44, %v583_v48  ;;  %v1864_v55 = vrot.slane %v510_v44, %v635_v49  ;;  %v1868_v57 = vrot.slane %v511_v45, %v531_v47  ;;  %v1878_v62 = vld [vmem:[#allocation2 + $0x61] sm:$0xff]  ;;  %v1917_v25 = vld [vmem:[#allocation2 + $0x79] sm:$0xff]  ;;  %v1929_v31 = vld [vmem:[#allocation2 + $0x90] sm:$0xff]  ;;  %p1532_p6 = scmp.ne.s32.totalorder %s2285_s17, %s1531_s12  ;;  %s1535_s14 = sshll.u32 %s1626_s13, 4  ;;  %s1536_s14 = int_to_ptr.vmem [resolvable:$false] %s1535_s14 }
  0x47   : > { %v1870_v58 = vrot.slane %v511_v45, %v583_v48  ;;  %v1872_v59 = vrot.slane %v511_v45, %v635_v49  ;;  %v1874_v60 = vrot.slane %v512_v46, %v531_v47  ;;  %v1883_v2 = vrot.slane %v512_v46, %v583_v48  ;;  %v1885_v3 = vld [vmem:[#allocation2 + $0x62] sm:$0xff]  ;;  %v1919_v26 = vld [vmem:[#allocation2 + $0x7a] sm:$0xff]  ;;  %v1931_v32 = vld [vmem:[#allocation2 + $0x91] sm:$0xff]  ;;  %s1537_s19 = scalar_lea.vmem %s1536_s14, 4096  ;;  %p1538_p10 = scmp.lt.s32.totalorder %s2285_s17, %s1536_s14 }
  0x48   : > { %v533_v63 = vmul.f32 %v1860_v53, %v513_v50  ;;  %v585_v0 = vmul.f32 %v1862_v54, %v565_v51  ;;  %v637_v1 = vmul.f32 %v1864_v55, %v617_v52  ;;  %v689_v4 = vmul.f32 %v1868_v57, %v1866_v56  ;;  %v1921_v27 = vld [vmem:[#allocation2 + $0x20] sm:$0xff]  ;;  %v1938_v39 = vld [vmem:[#allocation2 + $0x68] sm:$0xff]  ;;  %v1948_v44 = vld [vmem:[#allocation2 + $0x92] sm:$0xff]  ;;  %p1533_p7 = pnand %p1532_p6, %p1715_p3  ;;  %p1539_p11 = scmp.lt.s32.totalorder %s1537_s19, %s1531_s12 }
  0x49   : > { %v1897_v10 = vrot.slane %v512_v46, %v635_v49  ;;  %v541_v11 = vmul.f32 %v1860_v53, %v1876_v61  ;;  %v593_v12 = vmul.f32 %v1862_v54, %v1878_v62  ;;  %v741_v15 = vmul.f32 %v1870_v58, %v1889_v5  ;;  %v1940_v40 = vld [vmem:[#allocation2 + $0x69] sm:$0xff]  ;;  %v1952_v47 = vld [vmem:[#allocation2 + $0x21] sm:$0xff] }
  0x4a   : > { %v601_v8 = vadd.f32 %v585_v0, %v533_v63  ;;  %v793_v16 = vmul.f32 %v1872_v59, %v1891_v6  ;;  %v846_v17 = vmul.f32 %v1874_v60, %v1895_v9  ;;  %v645_v19 = vmul.f32 %v1864_v55, %v1885_v3  ;;  %v1942_v41 = vld [vmem:[#allocation2 + $0x6a] sm:$0xff]  ;;  %v1958_v52 = vld [vmem:[#allocation2 + $0x80] sm:$0xff]  ;;  %p1534_p9 = pneg %p1533_p7  ;;  %p1540_p12 = por %p1539_p11, %p1538_p10 }
  0x4b   : > { %v898_v22 = vmul.f32 %v1883_v2, %v1909_v18  ;;  %v609_v23 = vadd.f32 %v593_v12, %v541_v11  ;;  %v697_v24 = vmul.f32 %v1868_v57, %v1893_v7  ;;  %v749_v29 = vmul.f32 %v1870_v58, %v1917_v25  ;;  %v1960_v0 = vld [vmem:[#allocation2 + $0x22] sm:$0xff] }
  0x4c   : > { %v653_v21 = vadd.f32 %v637_v1, %v601_v8  ;;  %v801_v30 = vmul.f32 %v1872_v59, %v1919_v26  ;;  %v534_v33 = vmul.f32 %v1860_v53, %v514_v13  ;;  %v586_v34 = vmul.f32 %v1862_v54, %v566_v14  ;;  %v1962_v1 = vld [vmem:[#allocation2 + $0x38] sm:$0xff]  ;;  %p1541_p13 = pnand %p1540_p12, %p1534_p9 }
  0x4d   : > { %v950_v36 = vmul.f32 %v1897_v10, %v1923_v28  ;;  %v661_v37 = vadd.f32 %v645_v19, %v609_v23  ;;  %v638_v38 = vmul.f32 %v1864_v55, %v618_v20  ;;  %v854_v42 = vmul.f32 %v1874_v60, %v1929_v31  ;;  %v1974_v19 = vld [vmem:[#allocation2 + $0x39] sm:$0xff] }
  0x4e   : > { %v705_v35 = vadd.f32 %v689_v4, %v653_v21  ;;  %v906_v43 = vmul.f32 %v1883_v2, %v1931_v32  ;;  %v602_v45 = vadd.f32 %v586_v34, %v534_v33  ;;  %v690_v46 = vmul.f32 %v1868_v57, %v1921_v27  ;;  %v1978_v23 = vld [vmem:[#allocation2 + $0x3a] sm:$0xff] }
  0x4f   : > { %v713_v49 = vadd.f32 %v697_v24, %v661_v37  ;;  %v958_v50 = vmul.f32 %v1897_v10, %v1948_v44  ;;  %v742_v51 = vmul.f32 %v1870_v58, %v1952_v47  ;;  %v542_v4 = vmul.f32 %v1860_v53, %v1938_v39 }
  0x50   : > { %v757_v48 = vadd.f32 %v741_v15, %v705_v35  ;;  %v654_v63 = vadd.f32 %v638_v38, %v602_v45  ;;  %v594_v8 = vmul.f32 %v1862_v54, %v1940_v40  ;;  %v646_v11 = vmul.f32 %v1864_v55, %v1942_v41 }
  0x51   : > { %v765_v13 = vadd.f32 %v749_v29, %v713_v49  ;;  %v794_v14 = vmul.f32 %v1872_v59, %v1960_v0  ;;  %v847_v15 = vmul.f32 %v1874_v60, %v1962_v1  ;;  %v899_v21 = vmul.f32 %v1883_v2, %v1974_v19 }
  0x52   : > { %v809_v12 = vadd.f32 %v793_v16, %v757_v48  ;;  %v706_v20 = vadd.f32 %v690_v46, %v654_v63  ;;  %v610_v24 = vadd.f32 %v594_v8, %v542_v4  ;;  %v698_v33 = vmul.f32 %v1868_v57, %v1958_v52  ;;  %v1982_v16 = vld [vmem:[#allocation2 + $0x81] sm:$0xff] }
  0x53   : > { %v817_v34 = vadd.f32 %v801_v30, %v765_v13  ;;  %v951_v35 = vmul.f32 %v1897_v10, %v1978_v23  ;;  %v750_v37 = vmul.f32 %v1870_v58, %v1982_v16  ;;  %v1988_v46 = vld [vmem:[#allocation2 + $0x82] sm:$0xff]  ;;  %v535_v48 = vmul.f32 %v1866_v56, %v1860_v53 }
  0x54   : > { %v862_v29 = vadd.f32 %v846_v17, %v809_v12  ;;  %v758_v38 = vadd.f32 %v742_v51, %v706_v20  ;;  %v662_v45 = vadd.f32 %v646_v11, %v610_v24  ;;  %v587_v49 = vmul.f32 %v1889_v5, %v1862_v54  ;;  %v1998_v51 = vld [vmem:[#allocation2 + $0x98] sm:$0xff] }
  0x55   : > { %v870_v4 = vadd.f32 %v854_v42, %v817_v34  ;;  %v802_v17 = vmul.f32 %v1872_v59, %v1988_v46  ;;  %v639_v30 = vmul.f32 %v1891_v6, %v1864_v55  ;;  %v2000_v11 = vld [vmem:[#allocation2 + $0x99] sm:$0xff]  ;;  %v691_v56 = vmul.f32 %v1895_v9, %v1868_v57 }
  0x56   : > { %v914_v63 = vadd.f32 %v898_v22, %v862_v29  ;;  %v810_v8 = vadd.f32 %v794_v14, %v758_v38  ;;  %v714_v12 = vadd.f32 %v698_v33, %v662_v45  ;;  %v603_v13 = vadd.f32 %v587_v49, %v535_v48  ;;  %v2024_v49 = vld [vmem:[#allocation2 + $0x48] sm:$0xff] }
  0x57   : > { %v922_v5 = vadd.f32 %v906_v43, %v870_v4  ;;  %v855_v22 = vmul.f32 %v1874_v60, %v1998_v51  ;;  %v907_v42 = vmul.f32 %v1883_v2, %v2000_v11  ;;  %v743_v33 = vmul.f32 %v1909_v18, %v1870_v58 }
  0x58   : > { %v966_v20 = vadd.f32 %v950_v36, %v914_v63  ;;  %v863_v24 = vadd.f32 %v847_v15, %v810_v8  ;;  %v766_v6 = vadd.f32 %v750_v37, %v714_v12  ;;  %v655_v14 = vadd.f32 %v639_v30, %v603_v13  ;;  %v2017_v15 = vld [vmem:[#allocation2 + $0x9a] sm:$0xff]  ;;  %v2030_v12 = vld [vmem:[#allocation2 + $0x49] sm:$0xff] }
  0x59   : > { %v974_v29 = vadd.f32 %v958_v50, %v922_v5  ;;  %v795_v34 = vmul.f32 %v1923_v28, %v1872_v59  ;;  %v543_v36 = vmul.f32 %v1893_v7, %v1860_v53  ;;  %v595_v43 = vmul.f32 %v1917_v25, %v1862_v54 }
  0x5a   : > { %1431 = vmatprep.mubr.msk.f32.mxu0 %vm408_vm0, %v966_v20  ;;  %v915_v38 = vadd.f32 %v899_v21, %v863_v24  ;;  %v818_v45 = vadd.f32 %v802_v17, %v766_v6  ;;  %v707_v37 = vadd.f32 %v691_v56, %v655_v14  ;;  %v647_v48 = vmul.f32 %v1919_v26, %v1864_v55  ;;  %v2039_v24 = vld [vmem:[#allocation2 + $0x4a] sm:$0xff] }
  0x5b   : > { %1443 = vmatprep.mubr.msk.f32.mxu1 %vm408_vm0, %v974_v29  ;;  %v959_v50 = vmul.f32 %v1897_v10, %v2017_v15  ;;  %v611_v63 = vadd.f32 %v595_v43, %v543_v36  ;;  %v699_v4 = vmul.f32 %v1929_v31, %v1868_v57  ;;  %v848_v8 = vmul.f32 %v1874_v60, %v2024_v49 }
  0x5c   : > { %v967_v30 = vadd.f32 %v951_v35, %v915_v38  ;;  %v871_v21 = vadd.f32 %v855_v22, %v818_v45  ;;  %v759_v17 = vadd.f32 %v743_v33, %v707_v37  ;;  %v900_v13 = vmul.f32 %v1883_v2, %v2030_v12  ;;  %v2049_v38 = vld [vmem:[#allocation2 + $0xa8] sm:$0xff] }
  0x5d   : > { %v663_v56 = vadd.f32 %v647_v48, %v611_v63  ;;  %v751_v20 = vmul.f32 %v1931_v32, %v1870_v58  ;;  %v536_v5 = vmul.f32 %v1921_v27, %v1860_v53  ;;  %v588_v6 = vmul.f32 %v1952_v47, %v1862_v54  ;;  %v2062_v63 = vld [vmem:[#allocation2 + $0xaa] sm:$0xff] }
  0x5e   : > { %1432 = vmatmul.mubr.msk.f32.vlgmr.msra.gmra.mxu0 %vm408_vm0, %v967_v30  ;;  %v923_v35 = vadd.f32 %v907_v42, %v871_v21  ;;  %v811_v22 = vadd.f32 %v795_v34, %v759_v17  ;;  %v640_v14 = vmul.f32 %v1960_v0, %v1864_v55  ;;  %v952_v33 = vmul.f32 %v1897_v10, %v2039_v24 }
  0x5f   : > { %v715_v29 = vadd.f32 %v699_v4, %v663_v56  ;;  %v803_v36 = vmul.f32 %v1948_v44, %v1872_v59  ;;  %v604_v42 = vadd.f32 %v588_v6, %v536_v5  ;;  %v692_v34 = vmul.f32 %v1962_v1, %v1868_v57 }
  0x60   : > { %v975_v27 = vadd.f32 %v959_v50, %v923_v35  ;;  %v864_v43 = vadd.f32 %v848_v8, %v811_v22  ;;  %v856_v47 = vmul.f32 %v1874_v60, %v2049_v38  ;;  %v744_v0 = vmul.f32 %v1974_v19, %v1870_v58  ;;  %v2060_v50 = vld [vmem:[#allocation2 + $0xa9] sm:$0xff] }
  0x61   : > { %v767_v45 = vadd.f32 %v751_v20, %v715_v29  ;;  %v544_v37 = vmul.f32 %v1958_v52, %v1860_v53  ;;  %v656_v4 = vadd.f32 %v640_v14, %v604_v42  ;;  %v596_v30 = vmul.f32 %v1982_v16, %v1862_v54  ;;  %v2074_v35 = vld [vmem:[#allocation2 + $0x50] sm:$0xff] }
  0x62   : > { %1444 = vmatmul.mubr.msk.f32.vlgmr.msra.gmra.mxu1 %vm408_vm0, %v975_v27  ;;  %v916_v48 = vadd.f32 %v900_v13, %v864_v43  ;;  %v648_v21 = vmul.f32 %v1988_v46, %v1864_v55  ;;  %v908_v8 = vmul.f32 %v1883_v2, %v2060_v50  ;;  %v960_v56 = vmul.f32 %v1897_v10, %v2062_v63  ;;  %v2085_v43 = vld [vmem:[#allocation2 + $0x51] sm:$0xff] }
  0x63   : > { %v819_v17 = vadd.f32 %v803_v36, %v767_v45  ;;  %v796_v13 = vmul.f32 %v1978_v23, %v1872_v59  ;;  %v708_v5 = vadd.f32 %v692_v34, %v656_v4  ;;  %v612_v22 = vadd.f32 %v596_v30, %v544_v37  ;;  %v2087_v42 = vld [vmem:[#allocation2 + $0x52] sm:$0xff] }
  0x64   : > { %v968_v20 = vadd.f32 %v952_v33, %v916_v48  ;;  %v700_v6 = vmul.f32 %v1998_v51, %v1868_v57  ;;  %v849_v29 = vmul.f32 %v1874_v60, %v2074_v35  ;;  %v752_v36 = vmul.f32 %v2000_v11, %v1870_v58 }
  0x65   : > { %v872_v14 = vadd.f32 %v856_v47, %v819_v17  ;;  %v537_v27 = vmul.f32 %v1895_v9, %v1860_v53  ;;  %v760_v33 = vadd.f32 %v744_v0, %v708_v5  ;;  %v664_v34 = vadd.f32 %v648_v21, %v612_v22  ;;  %v2099_v17 = vld [vmem:[#allocation2 + $0xb0] sm:$0xff] }
  0x66   : > { %1434 = vmatprep.mubr.msk.f32.mxu0 %vm408_vm0, %v968_v20  ;;  %v589_v45 = vmul.f32 %v1909_v18, %v1862_v54  ;;  %v641_v47 = vmul.f32 %v1923_v28, %v1864_v55  ;;  %v901_v48 = vmul.f32 %v1883_v2, %v2085_v43  ;;  %v953_v9 = vmul.f32 %v1897_v10, %v2087_v42 }
  0x67   : > { %v924_v37 = vadd.f32 %v908_v8, %v872_v14  ;;  %v804_v0 = vmul.f32 %v2017_v15, %v1872_v59  ;;  %v812_v4 = vadd.f32 %v796_v13, %v760_v33  ;;  %v716_v30 = vadd.f32 %v700_v6, %v664_v34  ;;  %v2109_v13 = vld [vmem:[#allocation2 + $0xb1] sm:$0xff] }
  0x68   : > { %v605_v21 = vadd.f32 %v589_v45, %v537_v27  ;;  %v693_v18 = vmul.f32 %v2024_v49, %v1868_v57  ;;  %v857_v28 = vmul.f32 %v1874_v60, %v2099_v17  ;;  %v745_v8 = vmul.f32 %v2030_v12, %v1870_v58  ;;  %v2122_v45 = vld [vmem:[#allocation2 + $0xb2] sm:$0xff] }
  0x69   : > { %v976_v20 = vadd.f32 %v960_v56, %v924_v37  ;;  %v545_v5 = vmul.f32 %v1929_v31, %v1860_v53  ;;  %v865_v22 = vadd.f32 %v849_v29, %v812_v4  ;;  %v768_v14 = vadd.f32 %v752_v36, %v716_v30 }
  0x6a   : > { %v657_v6 = vadd.f32 %v641_v47, %v605_v21  ;;  %v597_v27 = vmul.f32 %v1931_v32, %v1862_v54  ;;  %v909_v56 = vmul.f32 %v1883_v2, %v2109_v13  ;;  %v797_v33 = vmul.f32 %v2039_v24, %v1872_v59 }
  0x6b   : > { %1446 = vmatprep.mubr.msk.f32.mxu1 %vm408_vm0, %v976_v20  ;;  %v649_v34 = vmul.f32 %v1948_v44, %v1864_v55  ;;  %v701_v31 = vmul.f32 %v2049_v38, %v1868_v57  ;;  %v917_v29 = vadd.f32 %v901_v48, %v865_v22  ;;  %v820_v36 = vadd.f32 %v804_v0, %v768_v14 }
  0x6c   : > { %v709_v47 = vadd.f32 %v693_v18, %v657_v6  ;;  %v613_v32 = vadd.f32 %v597_v27, %v545_v5  ;;  %v961_v37 = vmul.f32 %v1897_v10, %v2122_v45  ;;  %v850_v4 = vmul.f32 %v1874_v60, %v1876_v61  ;;  %v890_v27 = vld [vmem:[#allocation2 + $0xc1] sm:$0xff] }
  0x6d   : > { %v753_v30 = vmul.f32 %v2060_v50, %v1870_v58  ;;  %v538_v44 = vmul.f32 %v1962_v1, %v1860_v53  ;;  %v969_v21 = vadd.f32 %v953_v9, %v917_v29  ;;  %v873_v20 = vadd.f32 %v857_v28, %v820_v36 }
  0x6e   : > { %v761_v48 = vadd.f32 %v745_v8, %v709_v47  ;;  %v665_v0 = vadd.f32 %v649_v34, %v613_v32  ;;  %v902_v18 = vmul.f32 %v1883_v2, %v1878_v62  ;;  %v954_v5 = vmul.f32 %v1897_v10, %v1885_v3  ;;  %v838_v8 = vld [vmem:[#allocation2 + $0xc0] sm:$0xff] }
  0x6f   : > { %v590_v22 = vmul.f32 %v1974_v19, %v1862_v54  ;;  %v642_v14 = vmul.f32 %v1978_v23, %v1864_v55  ;;  %1435 = vmatmul.mubr.msk.f32.gmra.mxu0 %vm408_vm0, %v969_v21  ;;  %v925_v6 = vadd.f32 %v909_v56, %v873_v20  ;;  %v805_v28 = vmul.f32 %v2062_v63, %v1872_v59 }
  0x70   : > { %v813_v1 = vadd.f32 %v797_v33, %v761_v48  ;;  %v717_v9 = vadd.f32 %v701_v31, %v665_v0  ;;  %v858_v34 = vmul.f32 %v1874_v60, %v838_v8  ;;  %v910_v29 = vmul.f32 %v1883_v2, %v890_v27  ;;  %v2149_v33 = vld [vmem:[#allocation2 + $0xc2] sm:$0xff] }
  0x71   : > { %v606_v36 = vadd.f32 %v590_v22, %v538_v44  ;;  %v694_v19 = vmul.f32 %v2074_v35, %v1868_v57  ;;  %v977_v47 = vadd.f32 %v961_v37, %v925_v6  ;;  %v546_v56 = vmul.f32 %v1998_v51, %v1860_v53 }
  0x72   : > { %v866_v23 = vadd.f32 %v850_v4, %v813_v1  ;;  %v769_v32 = vadd.f32 %v753_v30, %v717_v9  ;;  %v746_v21 = vmul.f32 %v2085_v43, %v1870_v58  ;;  %v598_v20 = vmul.f32 %v2000_v11, %v1862_v54 }
  0x73   : > { %v658_v31 = vadd.f32 %v642_v14, %v606_v36  ;;  %v650_v44 = vmul.f32 %v2017_v15, %v1864_v55  ;;  %1447 = vmatmul.mubr.msk.f32.gmra.mxu1 %vm408_vm0, %v977_v47  ;;  %v962_v30 = vmul.f32 %v1897_v10, %v2149_v33  ;;  %v798_v51 = vmul.f32 %v2087_v42, %v1872_v59 }
  0x74   : > { %v918_v37 = vadd.f32 %v902_v18, %v866_v23  ;;  %v821_v4 = vadd.f32 %v805_v28, %v769_v32  ;;  %v851_v0 = vmul.f32 %v1874_v60, %v1938_v39  ;;  %v614_v22 = vadd.f32 %v598_v20, %v546_v56  ;;  %v839_v32 = vld [vmem:[#allocation2 + $0xc8] sm:$0xff] }
  0x75   : > { %v710_v48 = vadd.f32 %v694_v19, %v658_v31  ;;  %v702_v11 = vmul.f32 %v2099_v17, %v1868_v57  ;;  %v754_v18 = vmul.f32 %v2109_v13, %v1870_v58  ;;  %v539_v6 = vmul.f32 %v2024_v49, %v1860_v53 }
  0x76   : > { %v970_v14 = vadd.f32 %v954_v5, %v918_v37  ;;  %v874_v15 = vadd.f32 %v858_v34, %v821_v4  ;;  %v666_v9 = vadd.f32 %v650_v44, %v614_v22  ;;  %v591_v28 = vmul.f32 %v2030_v12, %v1862_v54  ;;  %v891_v37 = vld [vmem:[#allocation2 + $0xc9] sm:$0xff] }
  0x77   : > { %v762_v1 = vadd.f32 %v746_v21, %v710_v48  ;;  %v643_v36 = vmul.f32 %v2039_v24, %v1864_v55  ;;  %v903_v5 = vmul.f32 %v1883_v2, %v1940_v40  ;;  %v955_v34 = vmul.f32 %v1897_v10, %v1942_v41  ;;  %v943_v22 = vld [vmem:[#allocation2 + $0xca] sm:$0xff] }
  0x78   : > { %1437 = vmatprep.mubr.msk.f32.mxu0 %vm408_vm0, %v970_v14  ;;  %v926_v19 = vadd.f32 %v910_v29, %v874_v15  ;;  %v806_v49 = vmul.f32 %v2122_v45, %v1872_v59  ;;  %v718_v23 = vadd.f32 %v702_v11, %v666_v9  ;;  %v607_v56 = vadd.f32 %v591_v28, %v539_v6 }
  0x79   : > { %v814_v47 = vadd.f32 %v798_v51, %v762_v1  ;;  %v695_v12 = vmul.f32 %v1868_v57, %v1876_v61  ;;  %v859_v31 = vmul.f32 %v1874_v60, %v839_v32  ;;  %v747_v29 = vmul.f32 %v1870_v58, %v1878_v62 }
  0x7a   : > { %v978_v24 = vadd.f32 %v962_v30, %v926_v19  ;;  %v547_v21 = vmul.f32 %v2049_v38, %v1860_v53  ;;  %v770_v44 = vadd.f32 %v754_v18, %v718_v23  ;;  %v659_v4 = vadd.f32 %v643_v36, %v607_v56 }
  0x7b   : > { %v867_v20 = vadd.f32 %v851_v0, %v814_v47  ;;  %v599_v51 = vmul.f32 %v2060_v50, %v1862_v54  ;;  %v911_v61 = vmul.f32 %v1883_v2, %v891_v37  ;;  %v799_v30 = vmul.f32 %v1872_v59, %v1885_v3 }
  0x7c   : > { %1449 = vmatprep.mubr.msk.f32.mxu1 %vm408_vm0, %v978_v24  ;;  %v651_v62 = vmul.f32 %v2062_v63, %v1864_v55  ;;  %v703_v48 = vmul.f32 %v838_v8, %v1868_v57  ;;  %v822_v0 = vadd.f32 %v806_v49, %v770_v44  ;;  %v711_v11 = vadd.f32 %v695_v12, %v659_v4  ;;  %v840_v8 = vld [vmem:[#allocation2 + $0xd8] sm:$0xff] }
  0x7d   : > { %v919_v38 = vadd.f32 %v903_v5, %v867_v20  ;;  %v615_v14 = vadd.f32 %v599_v51, %v547_v21  ;;  %v963_v15 = vmul.f32 %v1897_v10, %v943_v22  ;;  %v852_v50 = vmul.f32 %v1874_v60, %v1893_v7  ;;  %v944_v24 = vld [vmem:[#allocation2 + $0xda] sm:$0xff] }
  0x7e   : > { %v755_v18 = vmul.f32 %v890_v27, %v1870_v58  ;;  %v540_v3 = vmul.f32 %v2074_v35, %v1860_v53  ;;  %v875_v1 = vadd.f32 %v859_v31, %v822_v0  ;;  %v763_v63 = vadd.f32 %v747_v29, %v711_v11  ;;  %v893_v0 = vld [vmem:[#allocation2 + $0xe1] sm:$0xff] }
  0x7f   : > { %v971_v6 = vadd.f32 %v955_v34, %v919_v38  ;;  %v667_v9 = vadd.f32 %v651_v62, %v615_v14  ;;  %v904_v28 = vmul.f32 %v1883_v2, %v1917_v25  ;;  %v592_v36 = vmul.f32 %v2085_v43, %v1862_v54  ;;  %v892_v25 = vld [vmem:[#allocation2 + $0xd9] sm:$0xff] }
  0x80   : > { %v644_v19 = vmul.f32 %v2087_v42, %v1864_v55  ;;  %v927_v7 = vadd.f32 %v911_v61, %v875_v1  ;;  %v815_v27 = vadd.f32 %v799_v30, %v763_v63  ;;  %v807_v35 = vmul.f32 %v2149_v33, %v1872_v59  ;;  %v841_v62 = vld [vmem:[#allocation2 + $0xe0] sm:$0xff] }
  0x81   : > { %1438 = vmatmul.mubr.msk.f32.gmra.mxu0 %vm408_vm0, %v971_v6  ;;  %v719_v5 = vadd.f32 %v703_v48, %v667_v9  ;;  %v956_v34 = vmul.f32 %v1897_v10, %v1919_v26  ;;  %v860_v49 = vmul.f32 %v1874_v60, %v840_v8  ;;  %v608_v47 = vadd.f32 %v592_v36, %v540_v3 }
  0x82   : > { %v696_v43 = vmul.f32 %v1868_v57, %v1938_v39  ;;  %v979_v23 = vadd.f32 %v963_v15, %v927_v7  ;;  %v868_v42 = vadd.f32 %v852_v50, %v815_v27  ;;  %v548_v12 = vmul.f32 %v2099_v17, %v1860_v53 }
  0x83   : > { %v771_v56 = vadd.f32 %v755_v18, %v719_v5  ;;  %v660_v31 = vadd.f32 %v644_v19, %v608_v47  ;;  %v748_v33 = vmul.f32 %v1870_v58, %v1940_v40  ;;  %v600_v26 = vmul.f32 %v2109_v13, %v1862_v54 }
  0x84   : > { %v652_v29 = vmul.f32 %v2122_v45, %v1864_v55  ;;  %1450 = vmatmul.mubr.msk.f32.gmra.mxu1 %vm408_vm0, %v979_v23  ;;  %v920_v39 = vadd.f32 %v904_v28, %v868_v42  ;;  %v912_v20 = vmul.f32 %v1883_v2, %v892_v25  ;;  %v800_v53 = vmul.f32 %v1872_v59, %v1942_v41 }
  0x85   : > { %v823_v21 = vadd.f32 %v807_v35, %v771_v56  ;;  %v712_v44 = vadd.f32 %v696_v43, %v660_v31  ;;  %v616_v17 = vadd.f32 %v600_v26, %v548_v12  ;;  %v704_v4 = vmul.f32 %v839_v32, %v1868_v57 }
  0x86   : > { %v972_v40 = vadd.f32 %v956_v34, %v920_v39  ;;  %v964_v54 = vmul.f32 %v1897_v10, %v944_v24  ;;  %v853_v55 = vmul.f32 %v1874_v60, %v1958_v52  ;;  %v756_v61 = vmul.f32 %v891_v37, %v1870_v58  ;;  %v945_v37 = vld [vmem:[#allocation2 + $0xe2] sm:$0xff] }
  0x87   : > { %v876_v51 = vadd.f32 %v860_v49, %v823_v21  ;;  %v764_v13 = vadd.f32 %v748_v33, %v712_v44  ;;  %v668_v45 = vadd.f32 %v652_v29, %v616_v17  ;;  %v905_v41 = vmul.f32 %v1883_v2, %v1982_v16 }
  0x88   : > { %1440 = vmatprep.mubr.msk.f32.mxu0 %vm408_vm0, %v972_v40  ;;  %v808_v32 = vmul.f32 %v943_v22, %v1872_v59  ;;  %v957_v52 = vmul.f32 %v1897_v10, %v1988_v46  ;;  %v861_v58 = vmul.f32 %v1874_v60, %v841_v62  ;;  %v913_v16 = vmul.f32 %v1883_v2, %v893_v0  ;;  %v1379_v60 = vld [vmem:[%s2349_s5] ss:$0 sm:$0xff] }
  0x89   : > { %v928_v30 = vadd.f32 %v912_v20, %v876_v51  ;;  %v816_v48 = vadd.f32 %v800_v53, %v764_v13  ;;  %v720_v57 = vadd.f32 %v704_v4, %v668_v45  ;;  %v965_v22 = vmul.f32 %v1897_v10, %v945_v37 }
  0x8b   : > { %v980_v38 = vadd.f32 %v964_v54, %v928_v30  ;;  %v869_v11 = vadd.f32 %v853_v55, %v816_v48  ;;  %v772_v14 = vadd.f32 %v756_v61, %v720_v57 }
  0x8d   : > { %1452 = vmatprep.mubr.msk.f32.mxu1 %vm408_vm0, %v980_v38  ;;  %v921_v15 = vadd.f32 %v905_v41, %v869_v11  ;;  %v824_v50 = vadd.f32 %v808_v32, %v772_v14 }
  0x8f   : > { %v973_v18 = vadd.f32 %v957_v52, %v921_v15  ;;  %v877_v59 = vadd.f32 %v861_v58, %v824_v50 }
  0x91   : > { %1441 = vmatmul.mubr.msk.f32.gmra.mxu0 %vm408_vm0, %v973_v18  ;;  %v929_v46 = vadd.f32 %v913_v16, %v877_v59 }
  0x93   : > { %v981_v3 = vadd.f32 %v965_v22, %v929_v46 }
  0x95   : > { %1453 = vmatmul.mubr.msk.f32.gmra.mxu1 %vm408_vm0, %v981_v3 }
 0x11e   : > { %v1433_v6 = vpop.f32.mrf.mxu0 }
 0x11f   : > { %v1110_v2 = vadd.f32 %v1433_v6, %v1379_v60 }
 0x120   : > { %v1104_v1 = vpop.f32.mrf.mxu0 }
 0x121   : > { %1185 = vst.msk [vmem:[%s1840_s27 + $0x8] sm:$0xff] %vm1183_vm2, %v1110_v2  ;;  %v1105_v10 = vadd.f32 %v1379_v60, %v1104_v1 }
 0x122   : > { %v1445_v63 = vpop.f32.mrf.mxu1 }
 0x123   : > { %v1150_v9 = vadd.f32 %v1445_v63, %v1379_v60  ;;  %1184 = vst.msk [vmem:[%s1840_s27] sm:$0xff] %vm1183_vm2, %v1105_v10 }
 0x124   : > { %v1144_v8 = vpop.f32.mrf.mxu1 }
 0x125   : > { %1193 = vst.msk [vmem:[%s1840_s27 + $0x48] sm:$0xff] %vm1183_vm2, %v1150_v9  ;;  %v1145_v28 = vadd.f32 %v1379_v60, %v1144_v8 }
 0x127   : > { %1192 = vst.msk [vmem:[%s1840_s27 + $0x40] sm:$0xff] %vm1183_vm2, %v1145_v28 }
 0x12f   : > { %v1436_v36 = vpop.f32.mrf.mxu0 }
 0x130   : > { %v1120_v19 = vadd.f32 %v1436_v36, %v1379_v60 }
 0x131   : > { %v1114_v7 = vpop.f32.mrf.mxu0 }
 0x132   : > { %1187 = vst.msk [vmem:[%s1840_s27 + $0x18] sm:$0xff] %vm1183_vm2, %v1120_v19  ;;  %v1115_v27 = vadd.f32 %v1379_v60, %v1114_v7 }
 0x133   : > { %v1448_v5 = vpop.f32.mrf.mxu1 }
 0x134   : > { %v1160_v35 = vadd.f32 %v1448_v5, %v1379_v60  ;;  %1186 = vst.msk [vmem:[%s1840_s27 + $0x10] sm:$0xff] %vm1183_vm2, %v1115_v27 }
 0x135   : > { %v1154_v34 = vpop.f32.mrf.mxu1 }
 0x136   : > { %1195 = vst.msk [vmem:[%s1840_s27 + $0x58] sm:$0xff] %vm1183_vm2, %v1160_v35  ;;  %v1155_v49 = vadd.f32 %v1379_v60, %v1154_v34 }
 0x138   : > { %1194 = vst.msk [vmem:[%s1840_s27 + $0x50] sm:$0xff] %vm1183_vm2, %v1155_v49 }
 0x141   : > { %v1439_v25 = vpop.f32.mrf.mxu0 }
 0x142   : > { %v1130_v47 = vadd.f32 %v1439_v25, %v1379_v60 }
 0x143   : > { %v1124_v43 = vpop.f32.mrf.mxu0 }
 0x144   : > { %1189 = vst.msk [vmem:[%s1840_s27 + $0x28] sm:$0xff] %vm1183_vm2, %v1130_v47  ;;  %v1125_v23 = vadd.f32 %v1379_v60, %v1124_v43  ;;  %v1451_v42 = vpop.f32.mrf.mxu1 }
 0x145   : > { %v1170_v56 = vadd.f32 %v1451_v42, %v1379_v60 }
 0x146   : > { %1188 = vst.msk [vmem:[%s1840_s27 + $0x20] sm:$0xff] %vm1183_vm2, %v1125_v23  ;;  %v1164_v12 = vpop.f32.mrf.mxu1 }
 0x147   : > { %1197 = vst.msk [vmem:[%s1840_s27 + $0x68] sm:$0xff] %vm1183_vm2, %v1170_v56  ;;  %v1165_v24 = vadd.f32 %v1379_v60, %v1164_v12 }
 0x149   : > { %1196 = vst.msk [vmem:[%s1840_s27 + $0x60] sm:$0xff] %vm1183_vm2, %v1165_v24 }
 0x151   : > { %v1442_v31 = vpop.f32.mrf.mxu0 }
 0x152   : > { %v1140_v33 = vadd.f32 %v1442_v31, %v1379_v60 }
 0x153   : > { %v1134_v26 = vpop.f32.mrf.mxu0 }
 0x154   : > { %1191 = vst.msk [vmem:[%s1840_s27 + $0x38] sm:$0xff] %vm1183_vm2, %v1140_v33  ;;  %v1135_v29 = vadd.f32 %v1379_v60, %v1134_v26 }
 0x155   : > { %v1454_v39 = vpop.f32.mrf.mxu1 }
 0x156   : > { %v1180_v21 = vadd.f32 %v1454_v39, %v1379_v60  ;;  %1190 = vst.msk [vmem:[%s1840_s27 + $0x30] sm:$0xff] %vm1183_vm2, %v1135_v29 }
 0x157   : > { %v1174_v20 = vpop.f32.mrf.mxu1 }
 0x158   : > { %1199 = vst.msk [vmem:[%s1840_s27 + $0x78] sm:$0xff] %vm1183_vm2, %v1180_v21  ;;  %v1175_v44 = vadd.f32 %v1379_v60, %v1174_v20 }
 0x15a   : > { %1198 = vst.msk [vmem:[%s1840_s27 + $0x70] sm:$0xff] %vm1183_vm2, %v1175_v44 }
 0x15b   : > { %1544 = shalt.err (!%p1541_p13)
}
 0x15c   : > { %s1545_s16 = scalar_lea.hbm %s2283_s25, 2048  ;;  %s1549_s20 = scalar_lea.hbm %s2350_s6, 8192 }
 0x15d   : > { %p1546_p0 = scmp.ne.s32.totalorder %s2283_s25, %s1545_s16  ;;  %p1550_p4 = scmp.lt.s32.totalorder %s2283_s25, %s2350_s6 }
 0x15e   : > { %p1551_p5 = scmp.lt.s32.totalorder %s1549_s20, %s1545_s16 }
 0x15f   : > { %p1547_p1 = pnand %p1546_p0, %p1715_p3 }
 0x160   : > { %p1552_p6 = por %p1551_p5, %p1550_p4 }
 0x161   : > { %p1548_p2 = pneg %p1547_p1 }
 0x163   : > { %p1553_p7 = pnand %p1552_p6, %p1548_p2 }
 0x165   : > { %1556 = shalt.err (!%p1553_p7)
}
 0x166   : > { %s1627_s8 = smov 128   ;;  %s1628_s24 = smov 8  }
 0x167   : > { %1457 = dma.vmem_to_hbm [thread:$0]  (%p1715_p3), %s2285_s17, 2048, %s2283_s25, %s2293_s9, %s1627_s8, %s1627_s8, %s1628_s24  }
 0x168 PF: > { %p1463_p9 = scmp.ge.s32.totalorder %s1623_s28, 2  ;;  %s1232_s30 = sand.u32 1, %s1595_s21  }
 0x169   : > { %s1233_s12 = scalar_lea.sflag [#allocation4], %s1232_s30 }
 0x16a   : > { %p1460_p10 = pnand %p1463_p9, %p1724_p8 }
 0x16c   : > { %p1461_p11 = pneg %p1460_p10 }
 0x16e   : > { %1590 = dma.done.wait (%p1461_p11), %s1233_s12, 2048  }
 0x16f   : > { %1592 = vsyncadd (%p1461_p11), %s1233_s12, 4294965248  ;;  %s19_s28 = sadd.s32 1, %s1623_s28   ;;  %s2360_s25 = sld [smem:[#allocation6_spill]] }
 0x170   : > { %p16_p12 = scmp.ge.s32.totalorder %s19_s28, 6   ;;  %s2361_s10 = sld [smem:[#allocation7_spill]] }
 0x171   : > { %s2362_s27 = sld [smem:[#allocation8_spill]]  ;;  %s2363_s21 = smov %s1599_s22 }
 0x172   : > { %s2364_s22 = smov %s1603_s23  ;;  %s2365_s23 = smov %s1733_s15 }
 0x173   : > { %s2366_s24 = smov %s1615_s26  ;;  %18 = sbr.rel (!%p16_p12) target bundleno = 5 (0x5), region = 96 }
 0x176   : > { %s2367_s26 = smov %s2361_s10 }
 0x178   :  { %1238 = vsyncpa [#allocation4], 1 }
 0x179   :  { %1240 = vsyncpa [#allocation4 + $0x1], 1 }

</bundles_post_ra>
